<compile_context>
chip_gen: v7x
topology: tpu7x:2x2x1
jax: 0.10.0
libtpu: 0.0.40
codegen_flags: <defaults>
</compile_context>

<pallas_src>
import jax
import jax.numpy as jnp
from jax.experimental import pallas as pl
from jax.experimental.pallas import tpu as pltpu


def _head_kernel(seq_ref, mask_ref, w_ref, b_ref, out_ref, acc_ref):
    # seq_ref:  (Bt, St, H)   input dtype (f32 or bf16)
    # mask_ref: (Bt, 1, St)   f32, already scaled by 1/length
    # w_ref:    (H, 2)        f32 (decoder weight, pre-transposed)
    # b_ref:    (1, 2)        f32
    # out_ref:  (Bt, 2)       f32
    # acc_ref:  (Bt, H)       f32 VMEM scratch accumulator
    s = pl.program_id(1)

    @pl.when(s == 0)
    def _():
        acc_ref[...] = jnp.zeros_like(acc_ref)

    # Batched contraction over this S tile on the MXU:
    #   (Bt, 1, St) @ (Bt, St, H) -> (Bt, 1, H), accumulated in f32.
    # No (Bt, St, H) f32 intermediate is ever materialized.
    # (For bf16 inputs the mask is cast to bf16 to feed the MXU; the product
    # still accumulates in f32 via preferred_element_type.)
    partial = jnp.einsum(
        "bos,bsh->boh",
        mask_ref[...].astype(seq_ref.dtype),
        seq_ref[...],
        preferred_element_type=jnp.float32,
    )
    acc_ref[...] += partial[:, 0, :]

    @pl.when(s == pl.num_programs(1) - 1)
    def _():
        out = jnp.dot(acc_ref[...], w_ref[...],
                      preferred_element_type=jnp.float32)
        out_ref[...] = (out + b_ref[...]).astype(out_ref.dtype)


def _pick_tiles(S_pad, H, itemsize, target_tile_bytes):
    """Pick (Bt, St) satisfying TPU (8,128) block constraints and VMEM budget.

    S_pad is already a multiple of 128.  St is the largest multiple-of-128
    divisor of S_pad whose (Bt, St, H) seq tile fits the byte budget; if none
    fits (very large H), fall back to the SMALLEST legal tile (128).
    """
    Bt = 8  # B is padded to a multiple of 8 in the wrapper.
    cands = [c for c in range(128, S_pad + 1, 128) if S_pad % c == 0]
    St = cands[0]  # smallest legal tile = robust fallback
    for c in sorted(cands, reverse=True):
        if Bt * c * H * itemsize <= target_tile_bytes:
            St = c
            break
    return Bt, St


def bert_pivot_control_head(sequence_output, sequence_mask, weight, bias,
                            *, target_tile_bytes=12 << 20):
    """sequence_output: (B,S,H), sequence_mask: (B,S), weight: (2,H), bias: (2,)"""
    B, S, H = sequence_output.shape
    itemsize = jnp.dtype(sequence_output.dtype).itemsize

    # Fold 1/length into the mask so the kernel does a pure weighted sum.
    # (Matches PyTorch semantics exactly, including NaN for an all-zero row.)
    mask_f32 = sequence_mask.astype(jnp.float32)
    lengths = jnp.sum(mask_f32, axis=-1, keepdims=True)          # (B, 1)
    scaled_mask = mask_f32 / lengths                             # (B, S)

    # Pad B -> multiple of 8, S -> multiple of 128 so every block is aligned.
    # Padded mask entries are zero (contribute nothing); padded batch rows are
    # sliced off after the call.
    B_pad = -(-B // 8) * 8
    S_pad = -(-S // 128) * 128
    if (B_pad, S_pad) != (B, S):
        sequence_output = jnp.pad(
            sequence_output, ((0, B_pad - B), (0, S_pad - S), (0, 0)))
        scaled_mask = jnp.pad(scaled_mask, ((0, B_pad - B), (0, S_pad - S)))

    mask3d = scaled_mask.reshape(B_pad, 1, S_pad)                # (B, 1, S)
    w_t = weight.astype(jnp.float32).T                           # (H, 2)
    b2d = bias.astype(jnp.float32).reshape(1, 2)                 # (1, 2)

    Bt, St = _pick_tiles(S_pad, H, itemsize, target_tile_bytes)
    grid = (B_pad // Bt, S_pad // St)

    out = pl.pallas_call(
        _head_kernel,
        out_shape=jax.ShapeDtypeStruct((B_pad, 2), jnp.float32),
        grid=grid,
        in_specs=[
            pl.BlockSpec((Bt, St, H), lambda b, s: (b, s, 0)),
            pl.BlockSpec((Bt, 1, St), lambda b, s: (b, 0, s)),
            pl.BlockSpec((H, 2), lambda b, s: (0, 0)),   # tiny, stays resident
            pl.BlockSpec((1, 2), lambda b, s: (0, 0)),
        ],
        out_specs=pl.BlockSpec((Bt, 2), lambda b, s: (b, 0)),
        scratch_shapes=[pltpu.VMEM((Bt, H), jnp.float32)],
        compiler_params=pltpu.CompilerParams(
            dimension_semantics=("parallel", "arbitrary"),
            vmem_limit_bytes=48 * 1024 * 1024,
        ),
    )(sequence_output, mask3d, w_t, b2d)
    return out[:B]


def _reference(sequence_output, sequence_mask, weight, bias):
    seq = sequence_output.astype(jnp.float32)
    mask = sequence_mask.astype(jnp.float32)
    lengths = jnp.sum(mask, axis=-1).reshape(-1, 1, 1)
    pooled = jnp.sum(seq * mask[:, :, None] / lengths, axis=1)
    return pooled @ weight.astype(jnp.float32).T + bias.astype(jnp.float32)


if __name__ == "__main__":
    B, S, H = 2, 8, 32
    key = jax.random.PRNGKey(0)
    k_seq, k_w, k_b = jax.random.split(key, 3)

    sequence_output = jax.random.normal(k_seq, (B, S, H), dtype=jnp.float32)
    # mask: first few tokens valid per example (deterministic, nonzero lengths)
    lengths = jnp.array([5, 8], dtype=jnp.int32)
    sequence_mask = (jnp.arange(S)[None, :] < lengths[:, None]).astype(jnp.float32)

    # decoder parameters (nn.Linear(hidden_size, 2)), deterministic init
    decoder_weight = 0.02 * jax.random.normal(k_w, (2, H), dtype=jnp.float32)
    decoder_bias = 0.01 * jax.random.normal(k_b, (2,), dtype=jnp.float32)

    out = bert_pivot_control_head(sequence_output, sequence_mask,
                                  decoder_weight, decoder_bias)
    out = jax.block_until_ready(out)

    expected = _reference(sequence_output, sequence_mask,
                          decoder_weight, decoder_bias)
    assert out.shape == (B, 2)
    assert jnp.allclose(out, expected, atol=1e-5, rtol=1e-5), (out, expected)
    print("KERNEL_OK")
</pallas_src>

<mosaic_0001>
module attributes {stable_mosaic.version = 11 : i64} {
  func.func @_head_kernel(%arg0: i32, %arg1: i32, %arg2: memref<8x128x32xf32, #tpu.memory_space<vmem>>, %arg3: memref<8x1x128xf32, #tpu.memory_space<vmem>>, %arg4: memref<32x2xf32, #tpu.memory_space<vmem>>, %arg5: memref<1x2xf32, #tpu.memory_space<vmem>>, %arg6: memref<8x2xf32, #tpu.memory_space<vmem>>, %arg7: memref<8x32xf32, #tpu.memory_space<vmem>>) attributes {dimension_semantics = [#tpu.dimension_semantics<parallel>, #tpu.dimension_semantics<arbitrary>], iteration_bounds = array<i64: 1, 1>, scalar_prefetch = 0 : i64, scratch_operands = 1 : i64, tpu.core_type = #tpu.core_type<tc>, window_params = [{transform_indices = @transform_0, window_bounds = array<i64: 8, 128, 32>}, {transform_indices = @transform_1, window_bounds = array<i64: 8, 1, 128>}, {pipeline_mode = #tpu.pipeline_mode<synchronous>, transform_indices = @transform_2, window_bounds = array<i64: 32, 2>}, {pipeline_mode = #tpu.pipeline_mode<synchronous>, transform_indices = @transform_3, window_bounds = array<i64: 1, 2>}, {transform_indices = @transform_4, window_bounds = array<i64: 8, 2>}]} {
    %c0_i32 = arith.constant 0 : i32
    %0 = arith.cmpi eq, %arg1, %c0_i32 : i32
    %1 = arith.extui %0 : i1 to i32
    %c0_i32_0 = arith.constant 0 : i32
    %2 = arith.cmpi ne, %1, %c0_i32_0 : i32
    scf.if %2 {
      %cst_12 = arith.constant 0.000000e+00 : f32
      %13 = vector.broadcast %cst_12 : f32 to vector<8x32xf32>
      %c0_13 = arith.constant 0 : index
      %c0_14 = arith.constant 0 : index
      %14 = vector.load %arg7[%c0_13, %c0_14] : memref<8x32xf32, #tpu.memory_space<vmem>>, vector<8x32xf32>
      tpu.vector_store %arg7[%c0_13, %c0_14], %13 {strides = array<i32>} : memref<8x32xf32, #tpu.memory_space<vmem>>, vector<8x32xf32>,
    } else {
    }
    %c0 = arith.constant 0 : index
    %c0_1 = arith.constant 0 : index
    %c0_2 = arith.constant 0 : index
    %3 = vector.load %arg3[%c0, %c0_1, %c0_2] : memref<8x1x128xf32, #tpu.memory_space<vmem>>, vector<8x1x128xf32>
    %c0_3 = arith.constant 0 : index
    %c0_4 = arith.constant 0 : index
    %c0_5 = arith.constant 0 : index
    %4 = vector.load %arg2[%c0_3, %c0_4, %c0_5] : memref<8x128x32xf32, #tpu.memory_space<vmem>>, vector<8x128x32xf32>
    "tpu.trace_start"() <{level = 10 : i32, message = "bos,bsh->boh"}> : () -> ()
    %cst = arith.constant dense<0.000000e+00> : vector<8x1x32xf32>
    %5 = tpu.matmul %3, %4, %cst {dimension_numbers = #tpu.dot_dimension_numbers<[2], [1], [1], [2], [0, 0, 0, 1, 1, 2], [0], [0]>} : vector<8x1x128xf32>, vector<8x128x32xf32>, vector<8x1x32xf32> -> vector<8x1x32xf32>
    "tpu.trace_stop"() : () -> ()
    %c0_6 = arith.constant 0 : index
    %c0_7 = arith.constant 0 : index
    %6 = vector.load %arg7[%c0_6, %c0_7] : memref<8x32xf32, #tpu.memory_space<vmem>>, vector<8x32xf32>
    %7 = vector.shape_cast %5 : vector<8x1x32xf32> to vector<8x32xf32>
    %8 = arith.addf %6, %7 : vector<8x32xf32>
    %c0_8 = arith.constant 0 : index
    %c0_9 = arith.constant 0 : index
    %9 = vector.load %arg7[%c0_8, %c0_9] : memref<8x32xf32, #tpu.memory_space<vmem>>, vector<8x32xf32>
    tpu.vector_store %arg7[%c0_8, %c0_9], %8 {strides = array<i32>} : memref<8x32xf32, #tpu.memory_space<vmem>>, vector<8x32xf32>,
    %c0_i32_10 = arith.constant 0 : i32
    %10 = arith.cmpi eq, %arg1, %c0_i32_10 : i32
    %11 = arith.extui %10 : i1 to i32
    %c0_i32_11 = arith.constant 0 : i32
    %12 = arith.cmpi ne, %11, %c0_i32_11 : i32
    scf.if %12 {
      %c0_12 = arith.constant 0 : index
      %c0_13 = arith.constant 0 : index
      %13 = vector.load %arg7[%c0_12, %c0_13] : memref<8x32xf32, #tpu.memory_space<vmem>>, vector<8x32xf32>
      %c0_14 = arith.constant 0 : index
      %c0_15 = arith.constant 0 : index
      %14 = vector.load %arg4[%c0_14, %c0_15] : memref<32x2xf32, #tpu.memory_space<vmem>>, vector<32x2xf32>
      %cst_16 = arith.constant dense<0.000000e+00> : vector<8x2xf32>
      %15 = tpu.matmul %13, %14, %cst_16 {dimension_numbers = #tpu.dot_dimension_numbers<[1], [0], [0], [1], [0, 0, 1, 1], [], []>} : vector<8x32xf32>, vector<32x2xf32>, vector<8x2xf32> -> vector<8x2xf32>
      %c0_17 = arith.constant 0 : index
      %c0_18 = arith.constant 0 : index
      %16 = vector.load %arg5[%c0_17, %c0_18] : memref<1x2xf32, #tpu.memory_space<vmem>>, vector<1x2xf32>
      %17 = vector.broadcast %16 : vector<1x2xf32> to vector<8x2xf32>
      %18 = arith.addf %15, %17 : vector<8x2xf32>
      %c0_19 = arith.constant 0 : index
      %c0_20 = arith.constant 0 : index
      %19 = vector.load %arg6[%c0_19, %c0_20] : memref<8x2xf32, #tpu.memory_space<vmem>>, vector<8x2xf32>
      tpu.vector_store %arg6[%c0_19, %c0_20], %18 {strides = array<i32>} : memref<8x2xf32, #tpu.memory_space<vmem>>, vector<8x2xf32>,
    } else {
    }
    return
  }
  func.func @transform_0(%arg0: i32, %arg1: i32) -> (i32, i32, i32) {
    %c0_i32 = arith.constant 0 : i32
    %c0_i32_0 = arith.constant 0 : i32
    return %arg0, %arg1, %c0_i32 : i32, i32, i32
  }
  func.func @transform_1(%arg0: i32, %arg1: i32) -> (i32, i32, i32) {
    %c0_i32 = arith.constant 0 : i32
    %c0_i32_0 = arith.constant 0 : i32
    return %arg0, %c0_i32, %arg1 : i32, i32, i32
  }
  func.func @transform_2(%arg0: i32, %arg1: i32) -> (i32, i32) {
    %c0_i32 = arith.constant 0 : i32
    %c0_i32_0 = arith.constant 0 : i32
    %c0_i32_1 = arith.constant 0 : i32
    return %c0_i32, %c0_i32_0 : i32, i32
  }
  func.func @transform_3(%arg0: i32, %arg1: i32) -> (i32, i32) {
    %c0_i32 = arith.constant 0 : i32
    %c0_i32_0 = arith.constant 0 : i32
    %c0_i32_1 = arith.constant 0 : i32
    return %c0_i32, %c0_i32_0 : i32, i32
  }
  func.func @transform_4(%arg0: i32, %arg1: i32) -> (i32, i32) {
    %c0_i32 = arith.constant 0 : i32
    %c0_i32_0 = arith.constant 0 : i32
    return %arg0, %c0_i32 : i32, i32
  }
}

</mosaic_0001>

<bundles_post_ra>
// kernel: tpu_custom_call.1
= control target key start
LH: loop header
LB: loop body
LE: loop exit
PB: predicated region body
PF: predicated region fallthrough
CT: control target
= control target key end

     0   :  { %v1482_v0 = vmov 0.0|0.0   ;;  %vm1483_vm0 = vmmov 0   ;;  %v1484_v8 = vmov 0.0   ;;  %vm21_vm1 = vcmask 261120   ;;  %s2024_s0 = inlined_call_operand.vmem [shape: f32[8,128,32], index: 0, kind: input, shape index: {}]   ;;  %s2025_s1 = inlined_call_operand.vmem [shape: f32[8,1,128], index: 1, kind: input, shape index: {}]   ;;  %s2026_s2 = inlined_call_operand.vmem [shape: f32[32,2], index: 2, kind: input, shape index: {}]   ;;  %s2027_s3 = inlined_call_operand.vmem [shape: f32[1,2], index: 3, kind: input, shape index: {}]   ;;  %s2028_s4 = inlined_call_operand.vmem [shape: f32[8,2], index: 4, kind: output, shape index: {}]  }
   0x1   :  { %1281 = vmatprep.subr.bf16.mxu0 %v1482_v0  ;;  %1305 = vmatprep.subr.bf16.mxu1 %v1482_v0  ;;  %v31_v1 = vld [vmem:[%s2024_s0] sm:$0xff]  ;;  %v32_v2 = vld [vmem:[%s2024_s0 + $0x8] sm:$0xff]  ;;  %v33_v6 = vld [vmem:[%s2024_s0 + $0x10] sm:$0xff]  ;;  %22 = vst.msk [vmem:[#allocation2] sm:$0xff] %vm21_vm1, %v1484_v8  ;;  %vm729_vm2 = vcmask 1041409   ;;  %vm732_vm3 = vcmask 1042434  }
   0x2   :  { %v47_v3 = vld [vmem:[%s2024_s0 + $0x80] sm:$0xff]  ;;  %v1282_v4 = vpack.c.bf16 %v32_v2, %v31_v1  ;;  %v48_v5 = vld [vmem:[%s2024_s0 + $0x88] sm:$0xff]  ;;  %v34_v7 = vld [vmem:[%s2024_s0 + $0x18] sm:$0xff]  ;;  %1022 = vmatprep.mubr.msk.f32.mxu0 %vm1483_vm0, %v1484_v8  ;;  %1057 = vmatprep.mubr.msk.f32.mxu1 %vm1483_vm0, %v1484_v8  ;;  %vm735_vm4 = vcmask 1043459   ;;  %vm738_vm5 = vcmask 1044484   ;;  %vm741_vm6 = vcmask 1045509  }
   0x3   :  { %v1306_v9 = vpack.c.bf16 %v48_v5, %v47_v3  ;;  %v49_v10 = vld [vmem:[%s2024_s0 + $0x90] sm:$0xff]  ;;  %v50_v11 = vld [vmem:[%s2024_s0 + $0x98] sm:$0xff]  ;;  %v1285_v12 = vpack.c.bf16 %v34_v7, %v33_v6  ;;  %v35_v14 = vld [vmem:[%s2024_s0 + $0x20] sm:$0xff]  ;;  %vm744_vm7 = vcmask 1046534   ;;  %vm747_vm8 = vcmask 1047559  }
   0x4   :  { %1283 = vmatpush3.bf16.msra.mxu0 %v1282_v4  ;;  %v1309_v13 = vpack.c.bf16 %v50_v11, %v49_v10  ;;  %v36_v15 = vld [vmem:[%s2024_s0 + $0x28] sm:$0xff]  ;;  %v51_v16 = vld [vmem:[%s2024_s0 + $0xa0] sm:$0xff]  ;;  %v37_v20 = vld [vmem:[%s2024_s0 + $0x30] sm:$0xff]  ;;  %vm841_vm9 = vcmask 15360  }
   0x5   :  { %1307 = vmatpush3.bf16.msra.mxu1 %v1306_v9  ;;  %1284 = vmatprep.subr.bf16.mxu0 %v1482_v0  ;;  %v52_v17 = vld [vmem:[%s2024_s0 + $0xa8] sm:$0xff]  ;;  %v1288_v18 = vpack.c.bf16 %v36_v15, %v35_v14  ;;  %v38_v21 = vld [vmem:[%s2024_s0 + $0x38] sm:$0xff]  ;;  %v53_v22 = vld [vmem:[%s2024_s0 + $0xb0] sm:$0xff] }
   0x6   :  { %1308 = vmatprep.subr.bf16.mxu1 %v1482_v0  ;;  %v1312_v19 = vpack.c.bf16 %v52_v17, %v51_v16  ;;  %v54_v23 = vld [vmem:[%s2024_s0 + $0xb8] sm:$0xff]  ;;  %v1291_v24 = vpack.c.bf16 %v38_v21, %v37_v20  ;;  %v39_v26 = vld [vmem:[%s2024_s0 + $0x40] sm:$0xff]  ;;  %v40_v27 = vld [vmem:[%s2024_s0 + $0x48] sm:$0xff] }
   0x7   :  { %v1315_v25 = vpack.c.bf16 %v54_v23, %v53_v22  ;;  %v55_v28 = vld [vmem:[%s2024_s0 + $0xc0] sm:$0xff]  ;;  %v56_v29 = vld [vmem:[%s2024_s0 + $0xc8] sm:$0xff]  ;;  %v1294_v30 = vpack.c.bf16 %v40_v27, %v39_v26  ;;  %v41_v32 = vld [vmem:[%s2024_s0 + $0x50] sm:$0xff] }
   0x8   :  { %1286 = vmatpush3.bf16.msra.mxu0 %v1285_v12  ;;  %v1318_v31 = vpack.c.bf16 %v56_v29, %v55_v28  ;;  %v42_v33 = vld [vmem:[%s2024_s0 + $0x58] sm:$0xff]  ;;  %v57_v34 = vld [vmem:[%s2024_s0 + $0xd0] sm:$0xff]  ;;  %v43_v38 = vld [vmem:[%s2024_s0 + $0x60] sm:$0xff] }
   0x9   :  { %1310 = vmatpush3.bf16.msra.mxu1 %v1309_v13  ;;  %1287 = vmatprep.subr.bf16.mxu0 %v1482_v0  ;;  %v58_v35 = vld [vmem:[%s2024_s0 + $0xd8] sm:$0xff]  ;;  %v1297_v36 = vpack.c.bf16 %v42_v33, %v41_v32  ;;  %v44_v39 = vld [vmem:[%s2024_s0 + $0x68] sm:$0xff]  ;;  %v59_v40 = vld [vmem:[%s2024_s0 + $0xe0] sm:$0xff] }
   0xa   :  { %1311 = vmatprep.subr.bf16.mxu1 %v1482_v0  ;;  %v1321_v37 = vpack.c.bf16 %v58_v35, %v57_v34  ;;  %v60_v41 = vld [vmem:[%s2024_s0 + $0xe8] sm:$0xff]  ;;  %v1300_v42 = vpack.c.bf16 %v44_v39, %v43_v38  ;;  %v45_v44 = vld [vmem:[%s2024_s0 + $0x70] sm:$0xff]  ;;  %v46_v45 = vld [vmem:[%s2024_s0 + $0x78] sm:$0xff] }
   0xb   :  { %v1324_v43 = vpack.c.bf16 %v60_v41, %v59_v40  ;;  %v61_v46 = vld [vmem:[%s2024_s0 + $0xf0] sm:$0xff]  ;;  %v62_v47 = vld [vmem:[%s2024_s0 + $0xf8] sm:$0xff]  ;;  %v1303_v48 = vpack.c.bf16 %v46_v45, %v45_v44  ;;  %v63_v50 = vld [vmem:[%s2024_s0 + $0x100] sm:$0xff] }
   0xc   :  { %1289 = vmatpush3.bf16.msra.mxu0 %v1288_v18  ;;  %v1327_v49 = vpack.c.bf16 %v62_v47, %v61_v46  ;;  %v64_v51 = vld [vmem:[%s2024_s0 + $0x108] sm:$0xff]  ;;  %v79_v52 = vld [vmem:[%s2024_s0 + $0x180] sm:$0xff]  ;;  %v65_v58 = vld [vmem:[%s2024_s0 + $0x110] sm:$0xff] }
   0xd   :  { %1313 = vmatpush3.bf16.msra.mxu1 %v1312_v19  ;;  %1290 = vmatprep.subr.bf16.mxu0 %v1482_v0  ;;  %v80_v53 = vld [vmem:[%s2024_s0 + $0x188] sm:$0xff]  ;;  %v23_v54 = vld [vmem:[%s2025_s1] sm:$0x1]  ;;  %v1330_v55 = vpack.c.bf16 %v64_v51, %v63_v50  ;;  %v24_v56 = vld [vmem:[%s2025_s1 + $0x1] sm:$0x1] }
   0xe   :  { %1314 = vmatprep.subr.bf16.mxu1 %v1482_v0  ;;  %v1354_v57 = vpack.c.bf16 %v80_v53, %v79_v52  ;;  %v66_v59 = vld [vmem:[%s2024_s0 + $0x118] sm:$0xff]  ;;  %v81_v60 = vld [vmem:[%s2024_s0 + $0x190] sm:$0xff]  ;;  %v67_v1 = vld [vmem:[%s2024_s0 + $0x120] sm:$0xff] }
   0xf   :  { %v82_v61 = vld [vmem:[%s2024_s0 + $0x198] sm:$0xff]  ;;  %v1333_v62 = vpack.c.bf16 %v66_v59, %v65_v58  ;;  %v68_v2 = vld [vmem:[%s2024_s0 + $0x128] sm:$0xff]  ;;  %v83_v3 = vld [vmem:[%s2024_s0 + $0x1a0] sm:$0xff] }
  0x10   :  { %1292 = vmatpush3.bf16.msra.mxu0 %v1291_v24  ;;  %v1357_v63 = vpack.c.bf16 %v82_v61, %v81_v60  ;;  %v84_v4 = vld [vmem:[%s2024_s0 + $0x1a8] sm:$0xff]  ;;  %v1336_v5 = vpack.c.bf16 %v68_v2, %v67_v1  ;;  %v69_v7 = vld [vmem:[%s2024_s0 + $0x130] sm:$0xff]  ;;  %v70_v9 = vld [vmem:[%s2024_s0 + $0x138] sm:$0xff] }
  0x11   :  { %1316 = vmatpush3.bf16.msra.mxu1 %v1315_v25  ;;  %1293 = vmatprep.subr.bf16.mxu0 %v1482_v0  ;;  %v1360_v6 = vpack.c.bf16 %v84_v4, %v83_v3  ;;  %v85_v10 = vld [vmem:[%s2024_s0 + $0x1b0] sm:$0xff]  ;;  %v86_v11 = vld [vmem:[%s2024_s0 + $0x1b8] sm:$0xff]  ;;  %v1339_v12 = vpack.c.bf16 %v70_v9, %v69_v7  ;;  %v71_v14 = vld [vmem:[%s2024_s0 + $0x140] sm:$0xff] }
  0x12   :  { %1317 = vmatprep.subr.bf16.mxu1 %v1482_v0  ;;  %v1363_v13 = vpack.c.bf16 %v86_v11, %v85_v10  ;;  %v72_v15 = vld [vmem:[%s2024_s0 + $0x148] sm:$0xff]  ;;  %v87_v16 = vld [vmem:[%s2024_s0 + $0x1c0] sm:$0xff]  ;;  %v73_v20 = vld [vmem:[%s2024_s0 + $0x150] sm:$0xff] }
  0x13   :  { %v88_v17 = vld [vmem:[%s2024_s0 + $0x1c8] sm:$0xff]  ;;  %v1342_v18 = vpack.c.bf16 %v72_v15, %v71_v14  ;;  %v74_v21 = vld [vmem:[%s2024_s0 + $0x158] sm:$0xff]  ;;  %v89_v22 = vld [vmem:[%s2024_s0 + $0x1d0] sm:$0xff] }
  0x14   :  { %1295 = vmatpush3.bf16.msra.mxu0 %v1294_v30  ;;  %v1366_v19 = vpack.c.bf16 %v88_v17, %v87_v16  ;;  %v90_v23 = vld [vmem:[%s2024_s0 + $0x1d8] sm:$0xff]  ;;  %v1345_v24 = vpack.c.bf16 %v74_v21, %v73_v20  ;;  %v75_v26 = vld [vmem:[%s2024_s0 + $0x160] sm:$0xff]  ;;  %v76_v27 = vld [vmem:[%s2024_s0 + $0x168] sm:$0xff] }
  0x15   :  { %1319 = vmatpush3.bf16.msra.mxu1 %v1318_v31  ;;  %1296 = vmatprep.subr.bf16.mxu0 %v1482_v0  ;;  %v1369_v25 = vpack.c.bf16 %v90_v23, %v89_v22  ;;  %v91_v28 = vld [vmem:[%s2024_s0 + $0x1e0] sm:$0xff]  ;;  %v92_v29 = vld [vmem:[%s2024_s0 + $0x1e8] sm:$0xff]  ;;  %v1348_v30 = vpack.c.bf16 %v76_v27, %v75_v26  ;;  %v77_v32 = vld [vmem:[%s2024_s0 + $0x170] sm:$0xff] }
  0x16   :  { %1320 = vmatprep.subr.bf16.mxu1 %v1482_v0  ;;  %v1372_v31 = vpack.c.bf16 %v92_v29, %v91_v28  ;;  %v78_v33 = vld [vmem:[%s2024_s0 + $0x178] sm:$0xff]  ;;  %v93_v34 = vld [vmem:[%s2024_s0 + $0x1f0] sm:$0xff]  ;;  %v95_v38 = vld [vmem:[%s2024_s0 + $0x200] sm:$0xff] }
  0x17   :  { %v94_v35 = vld [vmem:[%s2024_s0 + $0x1f8] sm:$0xff]  ;;  %v96_v39 = vld [vmem:[%s2024_s0 + $0x208] sm:$0xff]  ;;  %v111_v40 = vld [vmem:[%s2024_s0 + $0x280] sm:$0xff] }
  0x18   :  { %1298 = vmatpush3.bf16.msra.mxu0 %v1297_v36  ;;  %v1351_v36 = vpack.c.bf16 %v78_v33, %v77_v32  ;;  %v112_v41 = vld [vmem:[%s2024_s0 + $0x288] sm:$0xff]  ;;  %v26_v44 = vld [vmem:[%s2025_s1 + $0x3] sm:$0x1]  ;;  %v97_v46 = vld [vmem:[%s2024_s0 + $0x210] sm:$0xff] }
  0x19   :  { %1322 = vmatpush3.bf16.msra.mxu1 %v1321_v37  ;;  %1299 = vmatprep.subr.bf16.mxu0 %v1482_v0  ;;  %v1375_v37 = vpack.c.bf16 %v94_v35, %v93_v34  ;;  %v1402_v45 = vpack.c.bf16 %v112_v41, %v111_v40  ;;  %v98_v47 = vld [vmem:[%s2024_s0 + $0x218] sm:$0xff]  ;;  %v99_v52 = vld [vmem:[%s2024_s0 + $0x220] sm:$0xff]  ;;  %v100_v53 = vld [vmem:[%s2024_s0 + $0x228] sm:$0xff] }
  0x1a   :  { %1323 = vmatprep.subr.bf16.mxu1 %v1482_v0  ;;  %v1381_v50 = vpack.c.bf16 %v98_v47, %v97_v46  ;;  %v101_v58 = vld [vmem:[%s2024_s0 + $0x230] sm:$0xff]  ;;  %v102_v59 = vld [vmem:[%s2024_s0 + $0x238] sm:$0xff]  ;;  %v103_v1 = vld [vmem:[%s2024_s0 + $0x240] sm:$0xff] }
  0x1b   :  { %v117_v60 = vld [vmem:[%s2024_s0 + $0x2b0] sm:$0xff]  ;;  %v118_v61 = vld [vmem:[%s2024_s0 + $0x2b8] sm:$0xff]  ;;  %v104_v2 = vld [vmem:[%s2024_s0 + $0x248] sm:$0xff] }
  0x1c   :  { %1301 = vmatpush3.bf16.msra.mxu0 %v1300_v42  ;;  %v25_v42 = vld [vmem:[%s2025_s1 + $0x2] sm:$0x1]  ;;  %v120_v4 = vld [vmem:[%s2024_s0 + $0x2c8] sm:$0xff]  ;;  %v105_v7 = vld [vmem:[%s2024_s0 + $0x250] sm:$0xff] }
  0x1d   :  { %1325 = vmatpush3.bf16.msra.mxu1 %v1324_v43  ;;  %1302 = vmatprep.subr.bf16.mxu0 %v1482_v0  ;;  %v1378_v43 = vpack.c.bf16 %v96_v39, %v95_v38  ;;  %v119_v3 = vld [vmem:[%s2024_s0 + $0x2c0] sm:$0xff]  ;;  %v106_v9 = vld [vmem:[%s2024_s0 + $0x258] sm:$0xff]  ;;  %v121_v10 = vld [vmem:[%s2024_s0 + $0x2d0] sm:$0xff] }
  0x1e   :  { %1326 = vmatprep.subr.bf16.mxu1 %v1482_v0  ;;  %v122_v11 = vld [vmem:[%s2024_s0 + $0x2d8] sm:$0xff]  ;;  %v107_v14 = vld [vmem:[%s2024_s0 + $0x260] sm:$0xff]  ;;  %v108_v15 = vld [vmem:[%s2024_s0 + $0x268] sm:$0xff] }
  0x1f   :  { %v123_v16 = vld [vmem:[%s2024_s0 + $0x2e0] sm:$0xff]  ;;  %v124_v17 = vld [vmem:[%s2024_s0 + $0x2e8] sm:$0xff]  ;;  %v109_v20 = vld [vmem:[%s2024_s0 + $0x270] sm:$0xff] }
  0x20   :  { %1304 = vmatpush3.bf16.msra.mxu0 %v1303_v48  ;;  %v113_v48 = vld [vmem:[%s2024_s0 + $0x290] sm:$0xff]  ;;  %v110_v21 = vld [vmem:[%s2024_s0 + $0x278] sm:$0xff]  ;;  %v127_v26 = vld [vmem:[%s2024_s0 + $0x300] sm:$0xff] }
  0x21   :  { %1328 = vmatpush3.bf16.msra.mxu1 %v1327_v49  ;;  %1329 = vmatprep.subr.bf16.mxu0 %v1482_v0  ;;  %v114_v49 = vld [vmem:[%s2024_s0 + $0x298] sm:$0xff]  ;;  %v125_v22 = vld [vmem:[%s2024_s0 + $0x2f0] sm:$0xff]  ;;  %v128_v27 = vld [vmem:[%s2024_s0 + $0x308] sm:$0xff] }
  0x22   :  { %1353 = vmatprep.subr.bf16.mxu1 %v1482_v0  ;;  %v1405_v51 = vpack.c.bf16 %v114_v49, %v113_v48  ;;  %v126_v23 = vld [vmem:[%s2024_s0 + $0x2f8] sm:$0xff]  ;;  %v143_v28 = vld [vmem:[%s2024_s0 + $0x380] sm:$0xff]  ;;  %v144_v29 = vld [vmem:[%s2024_s0 + $0x388] sm:$0xff] }
  0x23   :  { %1023 = vmatmul.mubr.f32.vlgmr.msra.gmra.mrb[0].mxu0 %v23_v54  ;;  %v115_v54 = vld [vmem:[%s2024_s0 + $0x2a0] sm:$0xff]  ;;  %v1450_v33 = vpack.c.bf16 %v144_v29, %v143_v28  ;;  %v129_v34 = vld [vmem:[%s2024_s0 + $0x310] sm:$0xff]  ;;  %v130_v35 = vld [vmem:[%s2024_s0 + $0x318] sm:$0xff] }
  0x24   :  { %1058 = vmatmul.mubr.f32.vlgmr.msra.gmra.mrb[0].mxu1 %v24_v56  ;;  %1331 = vmatpush3.bf16.msra.mxu0 %v1330_v55  ;;  %v116_v55 = vld [vmem:[%s2024_s0 + $0x2a8] sm:$0xff]  ;;  %v1384_v56 = vpack.c.bf16 %v100_v53, %v99_v52  ;;  %v28_v32 = vld [vmem:[%s2025_s1 + $0x5] sm:$0x1]  ;;  %v1429_v38 = vpack.c.bf16 %v130_v35, %v129_v34  ;;  %v133_v46 = vld [vmem:[%s2024_s0 + $0x330] sm:$0xff] }
  0x25   :  { %1355 = vmatpush3.bf16.msra.mxu1 %v1354_v57  ;;  %1332 = vmatprep.subr.bf16.mxu0 %v1482_v0  ;;  %v1408_v57 = vpack.c.bf16 %v116_v55, %v115_v54  ;;  %v131_v40 = vld [vmem:[%s2024_s0 + $0x320] sm:$0xff]  ;;  %v132_v41 = vld [vmem:[%s2024_s0 + $0x328] sm:$0xff]  ;;  %v134_v47 = vld [vmem:[%s2024_s0 + $0x338] sm:$0xff] }
  0x26   :  { %1356 = vmatprep.subr.bf16.mxu1 %v1482_v0  ;;  %1092 = vmatprep.mubr.msk.f32.mxu0 %vm1483_vm0, %v1484_v8  ;;  %v149_v48 = vld [vmem:[%s2024_s0 + $0x3b0] sm:$0xff]  ;;  %v150_v49 = vld [vmem:[%s2024_s0 + $0x3b8] sm:$0xff]  ;;  %v135_v52 = vld [vmem:[%s2024_s0 + $0x340] sm:$0xff] }
  0x27   :  { %1127 = vmatprep.mubr.msk.f32.mxu1 %vm1483_vm0, %v1484_v8  ;;  %v136_v53 = vld [vmem:[%s2024_s0 + $0x348] sm:$0xff]  ;;  %v151_v54 = vld [vmem:[%s2024_s0 + $0x3c0] sm:$0xff] }
  0x28   :  { %1334 = vmatpush3.bf16.msra.mxu0 %v1333_v62  ;;  %v1387_v62 = vpack.c.bf16 %v102_v59, %v101_v58  ;;  %v152_v55 = vld [vmem:[%s2024_s0 + $0x3c8] sm:$0xff]  ;;  %v137_v58 = vld [vmem:[%s2024_s0 + $0x350] sm:$0xff]  ;;  %v138_v59 = vld [vmem:[%s2024_s0 + $0x358] sm:$0xff] }
  0x29   :  { %1358 = vmatpush3.bf16.msra.mxu1 %v1357_v63  ;;  %1335 = vmatprep.subr.bf16.mxu0 %v1482_v0  ;;  %v1411_v63 = vpack.c.bf16 %v118_v61, %v117_v60  ;;  %v153_v60 = vld [vmem:[%s2024_s0 + $0x3d0] sm:$0xff]  ;;  %v154_v61 = vld [vmem:[%s2024_s0 + $0x3d8] sm:$0xff] }
  0x2a   :  { %1359 = vmatprep.subr.bf16.mxu1 %v1482_v0 }
  0x2c   :  { %1337 = vmatpush3.bf16.msra.mxu0 %v1336_v5  ;;  %v1390_v5 = vpack.c.bf16 %v104_v2, %v103_v1  ;;  %v139_v1 = vld [vmem:[%s2024_s0 + $0x360] sm:$0xff]  ;;  %v140_v2 = vld [vmem:[%s2024_s0 + $0x368] sm:$0xff] }
  0x2d   :  { %1361 = vmatpush3.bf16.msra.mxu1 %v1360_v6  ;;  %1338 = vmatprep.subr.bf16.mxu0 %v1482_v0  ;;  %v1414_v6 = vpack.c.bf16 %v120_v4, %v119_v3  ;;  %v155_v3 = vld [vmem:[%s2024_s0 + $0x3e0] sm:$0xff]  ;;  %v156_v4 = vld [vmem:[%s2024_s0 + $0x3e8] sm:$0xff] }
  0x2e   :  { %1362 = vmatprep.subr.bf16.mxu1 %v1482_v0 }
  0x30   :  { %1340 = vmatpush3.bf16.msra.mxu0 %v1339_v12  ;;  %v1393_v12 = vpack.c.bf16 %v106_v9, %v105_v7  ;;  %v141_v7 = vld [vmem:[%s2024_s0 + $0x370] sm:$0xff]  ;;  %v142_v9 = vld [vmem:[%s2024_s0 + $0x378] sm:$0xff] }
  0x31   :  { %1364 = vmatpush3.bf16.msra.mxu1 %v1363_v13  ;;  %1341 = vmatprep.subr.bf16.mxu0 %v1482_v0  ;;  %v1417_v13 = vpack.c.bf16 %v122_v11, %v121_v10  ;;  %v157_v10 = vld [vmem:[%s2024_s0 + $0x3f0] sm:$0xff]  ;;  %v158_v11 = vld [vmem:[%s2024_s0 + $0x3f8] sm:$0xff] }
  0x32   :  { %1365 = vmatprep.subr.bf16.mxu1 %v1482_v0 }
  0x34   :  { %1343 = vmatpush3.bf16.msra.mxu0 %v1342_v18  ;;  %v1396_v18 = vpack.c.bf16 %v108_v15, %v107_v14  ;;  %v29_v14 = vld [vmem:[%s2025_s1 + $0x6] sm:$0x1]  ;;  %v30_v15 = vld [vmem:[%s2025_s1 + $0x7] sm:$0x1] }
  0x35   :  { %1367 = vmatpush3.bf16.msra.mxu1 %v1366_v19  ;;  %1344 = vmatprep.subr.bf16.mxu0 %v1482_v0  ;;  %v1420_v19 = vpack.c.bf16 %v124_v17, %v123_v16  ;;  %v757_v16 = vld [vmem:[%s2026_s2] sm:$0xff]  ;;  %v758_v17 = vld [vmem:[%s2026_s2 + $0x8] sm:$0xff] }
  0x36   :  { %1368 = vmatprep.subr.bf16.mxu1 %v1482_v0 }
  0x38   :  { %1346 = vmatpush3.bf16.msra.mxu0 %v1345_v24  ;;  %v1399_v24 = vpack.c.bf16 %v110_v21, %v109_v20  ;;  %v760_v20 = vld [vmem:[%s2026_s2 + $0x18] sm:$0xff] }
  0x39   :  { %1370 = vmatpush3.bf16.msra.mxu1 %v1369_v25  ;;  %1347 = vmatprep.subr.bf16.mxu0 %v1482_v0  ;;  %v1423_v25 = vpack.c.bf16 %v126_v23, %v125_v22 }
  0x3a   :  { %1371 = vmatprep.subr.bf16.mxu1 %v1482_v0 }
  0x3c   :  { %1349 = vmatpush3.bf16.msra.mxu0 %v1348_v30  ;;  %v27_v30 = vld [vmem:[%s2025_s1 + $0x4] sm:$0x1] }
  0x3d   :  { %1373 = vmatpush3.bf16.msra.mxu1 %v1372_v31  ;;  %1350 = vmatprep.subr.bf16.mxu0 %v1482_v0  ;;  %v1426_v31 = vpack.c.bf16 %v128_v27, %v127_v26 }
  0x3e   :  { %1374 = vmatprep.subr.bf16.mxu1 %v1482_v0 }
  0x40   :  { %1352 = vmatpush3.bf16.msra.mxu0 %v1351_v36  ;;  %v145_v36 = vld [vmem:[%s2024_s0 + $0x390] sm:$0xff] }
  0x41   :  { %1376 = vmatpush3.bf16.msra.mxu1 %v1375_v37  ;;  %1377 = vmatprep.subr.bf16.mxu0 %v1482_v0  ;;  %v146_v37 = vld [vmem:[%s2024_s0 + $0x398] sm:$0xff] }
  0x42   :  { %1401 = vmatprep.subr.bf16.mxu1 %v1482_v0  ;;  %v1453_v39 = vpack.c.bf16 %v146_v37, %v145_v36 }
  0x43   :  { %1093 = vmatmul.mubr.f32.vlgmr.msra.gmra.mrb[2].mxu0 %v25_v42  ;;  %v147_v42 = vld [vmem:[%s2024_s0 + $0x3a0] sm:$0xff] }
  0x44   :  { %1128 = vmatmul.mubr.f32.vlgmr.msra.gmra.mrb[2].mxu1 %v26_v44  ;;  %1379 = vmatpush3.bf16.msra.mxu0 %v1378_v43  ;;  %v148_v43 = vld [vmem:[%s2024_s0 + $0x3a8] sm:$0xff]  ;;  %v1432_v44 = vpack.c.bf16 %v132_v41, %v131_v40 }
  0x45   :  { %1403 = vmatpush3.bf16.msra.mxu1 %v1402_v45  ;;  %1380 = vmatprep.subr.bf16.mxu0 %v1482_v0  ;;  %v1456_v45 = vpack.c.bf16 %v148_v43, %v147_v42 }
  0x46   :  { %1404 = vmatprep.subr.bf16.mxu1 %v1482_v0  ;;  %1162 = vmatprep.mubr.msk.f32.mxu0 %vm1483_vm0, %v1484_v8 }
  0x47   :  { %1197 = vmatprep.mubr.msk.f32.mxu1 %vm1483_vm0, %v1484_v8 }
  0x48   :  { %1382 = vmatpush3.bf16.msra.mxu0 %v1381_v50  ;;  %v1435_v50 = vpack.c.bf16 %v134_v47, %v133_v46 }
  0x49   :  { %1406 = vmatpush3.bf16.msra.mxu1 %v1405_v51  ;;  %1383 = vmatprep.subr.bf16.mxu0 %v1482_v0  ;;  %v1459_v51 = vpack.c.bf16 %v150_v49, %v149_v48  ;;  %v719_v48 = vld [vmem:[#allocation2] sm:$0xff] }
  0x4a   :  { %1407 = vmatprep.subr.bf16.mxu1 %v1482_v0 }
  0x4c   :  { %1385 = vmatpush3.bf16.msra.mxu0 %v1384_v56  ;;  %v1438_v56 = vpack.c.bf16 %v136_v53, %v135_v52  ;;  %v847_v53 = vld [vmem:[%s2027_s3] ss:$0 sm:$0xff] }
  0x4d   :  { %1409 = vmatpush3.bf16.msra.mxu1 %v1408_v57  ;;  %1386 = vmatprep.subr.bf16.mxu0 %v1482_v0  ;;  %v1462_v57 = vpack.c.bf16 %v152_v55, %v151_v54 }
  0x4e   :  { %1410 = vmatprep.subr.bf16.mxu1 %v1482_v0 }
  0x50   :  { %1388 = vmatpush3.bf16.msra.mxu0 %v1387_v62  ;;  %v1441_v62 = vpack.c.bf16 %v138_v59, %v137_v58 }
  0x51   :  { %1412 = vmatpush3.bf16.msra.mxu1 %v1411_v63  ;;  %1389 = vmatprep.subr.bf16.mxu0 %v1482_v0  ;;  %v1465_v63 = vpack.c.bf16 %v154_v61, %v153_v60 }
  0x52   :  { %1413 = vmatprep.subr.bf16.mxu1 %v1482_v0 }
  0x54   :  { %1391 = vmatpush3.bf16.msra.mxu0 %v1390_v5  ;;  %v1444_v5 = vpack.c.bf16 %v140_v2, %v139_v1 }
  0x55   :  { %1415 = vmatpush3.bf16.msra.mxu1 %v1414_v6  ;;  %1392 = vmatprep.subr.bf16.mxu0 %v1482_v0  ;;  %v1468_v6 = vpack.c.bf16 %v156_v4, %v155_v3 }
  0x56   :  { %1416 = vmatprep.subr.bf16.mxu1 %v1482_v0 }
  0x58   :  { %1394 = vmatpush3.bf16.msra.mxu0 %v1393_v12  ;;  %v1447_v12 = vpack.c.bf16 %v142_v9, %v141_v7 }
  0x59   :  { %1418 = vmatpush3.bf16.msra.mxu1 %v1417_v13  ;;  %1395 = vmatprep.subr.bf16.mxu0 %v1482_v0  ;;  %v1471_v13 = vpack.c.bf16 %v158_v11, %v157_v10 }
  0x5a   :  { %1419 = vmatprep.subr.bf16.mxu1 %v1482_v0 }
  0x5c   :  { %1397 = vmatpush3.bf16.msra.mxu0 %v1396_v18  ;;  %v759_v18 = vld [vmem:[%s2026_s2 + $0x10] sm:$0xff] }
  0x5d   :  { %1421 = vmatpush3.bf16.msra.mxu1 %v1420_v19  ;;  %1398 = vmatprep.subr.bf16.mxu0 %v1482_v0  ;;  %v1474_v19 = vpack.c.bf16 %v758_v17, %v757_v16  ;;  %v1477_v21 = vpack.c.bf16 %v760_v20, %v759_v18 }
  0x5e   :  { %1422 = vmatprep.subr.bf16.mxu1 %v1482_v0 }
  0x60   :  { %1400 = vmatpush3.bf16.msra.mxu0 %v1399_v24 }
  0x61   :  { %1424 = vmatpush3.bf16.msra.mxu1 %v1423_v25  ;;  %1425 = vmatprep.subr.bf16.mxu0 %v1482_v0 }
  0x62   :  { %1449 = vmatprep.subr.bf16.mxu1 %v1482_v0 }
  0x63   :  { %1163 = vmatmul.mubr.f32.vlgmr.msra.gmra.mrb[4].mxu0 %v27_v30 }
  0x64   :  { %1198 = vmatmul.mubr.f32.vlgmr.msra.gmra.mrb[4].mxu1 %v28_v32  ;;  %1427 = vmatpush3.bf16.msra.mxu0 %v1426_v31 }
  0x65   :  { %1451 = vmatpush3.bf16.msra.mxu1 %v1450_v33  ;;  %1428 = vmatprep.subr.bf16.mxu0 %v1482_v0 }
  0x66   :  { %1452 = vmatprep.subr.bf16.mxu1 %v1482_v0  ;;  %1232 = vmatprep.mubr.msk.f32.mxu0 %vm1483_vm0, %v1484_v8 }
  0x67   :  { %1267 = vmatprep.mubr.msk.f32.mxu1 %vm1483_vm0, %v1484_v8 }
  0x68   :  { %1430 = vmatpush3.bf16.msra.mxu0 %v1429_v38 }
  0x69   :  { %1454 = vmatpush3.bf16.msra.mxu1 %v1453_v39  ;;  %1431 = vmatprep.subr.bf16.mxu0 %v1482_v0 }
  0x6a   :  { %1455 = vmatprep.subr.bf16.mxu1 %v1482_v0 }
  0x6c   :  { %1433 = vmatpush3.bf16.msra.mxu0 %v1432_v44 }
  0x6d   :  { %1457 = vmatpush3.bf16.msra.mxu1 %v1456_v45  ;;  %1434 = vmatprep.subr.bf16.mxu0 %v1482_v0 }
  0x6e   :  { %1458 = vmatprep.subr.bf16.mxu1 %v1482_v0 }
  0x70   :  { %1436 = vmatpush3.bf16.msra.mxu0 %v1435_v50 }
  0x71   :  { %1460 = vmatpush3.bf16.msra.mxu1 %v1459_v51  ;;  %1437 = vmatprep.subr.bf16.mxu0 %v1482_v0 }
  0x72   :  { %1461 = vmatprep.subr.bf16.mxu1 %v1482_v0 }
  0x74   :  { %1439 = vmatpush3.bf16.msra.mxu0 %v1438_v56 }
  0x75   :  { %1463 = vmatpush3.bf16.msra.mxu1 %v1462_v57  ;;  %1440 = vmatprep.subr.bf16.mxu0 %v1482_v0 }
  0x76   :  { %1464 = vmatprep.subr.bf16.mxu1 %v1482_v0 }
  0x78   :  { %1442 = vmatpush3.bf16.msra.mxu0 %v1441_v62 }
  0x79   :  { %1466 = vmatpush3.bf16.msra.mxu1 %v1465_v63  ;;  %1443 = vmatprep.subr.bf16.mxu0 %v1482_v0 }
  0x7a   :  { %1467 = vmatprep.subr.bf16.mxu1 %v1482_v0 }
  0x7c   :  { %1445 = vmatpush3.bf16.msra.mxu0 %v1444_v5 }
  0x7d   :  { %1469 = vmatpush3.bf16.msra.mxu1 %v1468_v6  ;;  %1446 = vmatprep.subr.bf16.mxu0 %v1482_v0 }
  0x7e   :  { %1470 = vmatprep.subr.bf16.mxu1 %v1482_v0 }
  0x80   :  { %1448 = vmatpush3.bf16.msra.mxu0 %v1447_v12 }
  0x81   :  { %1472 = vmatpush3.bf16.msra.mxu1 %v1471_v13  ;;  %1473 = vmatprep.subr.bf16.mxu0 %v1482_v0 }
  0x83   :  { %1233 = vmatmul.mubr.f32.vlgmr.msra.gmra.mrb[6].mxu0 %v29_v14 }
  0x84   :  { %1268 = vmatmul.mubr.f32.vlgmr.msra.gmra.mrb[6].mxu1 %v30_v15  ;;  %1278 = vmatprep.mubr.msk.f32.mxu0 %vm1483_vm0, %v1484_v8 }
  0x85   :  { %1475 = vmatpush3.bf16.msra.mxu0 %v1474_v19 }
  0x86   :  { %1476 = vmatprep.subr.bf16.mxu0 %v1482_v0 }
  0x89   :  { %1478 = vmatpush3.bf16.msra.mxu0 %v1477_v21 }
  0xf6   :  { %v225_v8 = vpop.f32.mrb[0].mxu0 }
  0xf7   :  { %v295_v22 = vpop.f32.mrb[0].mxu1  ;;  %v1024_v23 = vpop.f32.mrb[1].mxu0 }
  0xf8   :  { %v728_v24 = vrot.slane %v295_v22, 7  ;;  %v1059_v25 = vpop.f32.mrb[1].mxu1 }
  0xfa   :  { %v730_v26 = vsel %vm729_vm2, %v728_v24, %v225_v8 }
 0x116   :  { %v365_v27 = vpop.f32.mrb[2].mxu0 }
 0x117   :  { %v731_v28 = vrot.slane %v365_v27, 6  ;;  %v1094_v29 = vpop.f32.mrb[3].mxu0  ;;  %v435_v30 = vpop.f32.mrb[2].mxu1 }
 0x118   :  { %v734_v31 = vrot.slane %v435_v30, 5  ;;  %v1129_v32 = vpop.f32.mrb[3].mxu1 }
 0x119   :  { %v733_v33 = vsel %vm732_vm3, %v731_v28, %v730_v26 }
 0x11a   :  { %v736_v34 = vsel %vm735_vm4, %v734_v31, %v733_v33 }
 0x136   :  { %v505_v35 = vpop.f32.mrb[4].mxu0 }
 0x137   :  { %v737_v0 = vrot.slane %v505_v35, 4  ;;  %v1164_v36 = vpop.f32.mrb[5].mxu0  ;;  %v575_v37 = vpop.f32.mrb[4].mxu1 }
 0x138   :  { %v740_v38 = vrot.slane %v575_v37, 3  ;;  %v1199_v39 = vpop.f32.mrb[5].mxu1 }
 0x139   :  { %v739_v40 = vsel %vm738_vm5, %v737_v0, %v736_v34 }
 0x13a   :  { %v742_v41 = vsel %vm741_vm6, %v740_v38, %v739_v40 }
 0x156   :  { %v645_v42 = vpop.f32.mrb[6].mxu0 }
 0x157   :  { %v743_v43 = vrot.slane %v645_v42, 2  ;;  %v715_v44 = vpop.f32.mrb[6].mxu1  ;;  %v1234_v45 = vpop.f32.mrb[7].mxu0 }
 0x158   :  { %v746_v46 = vrot.slane %v715_v44, 1  ;;  %v1269_v47 = vpop.f32.mrb[7].mxu1 }
 0x159   :  { %v745_v49 = vsel %vm744_vm7, %v743_v43, %v742_v41 }
 0x15a   :  { %v748_v50 = vsel %vm747_vm8, %v746_v46, %v745_v49 }
 0x15b   :  { %v750_v51 = vadd.f32 %v748_v50, %v719_v48 }
 0x15d   :  { %752 = vst.msk [vmem:[#allocation2] sm:$0xff] %vm21_vm1, %v750_v51 }
 0x164   :  { %v756_v52 = vld [vmem:[#allocation2] sm:$0xff] }
 0x165   :  { %1279 = vmatmul.mubr.msk.f32.vlgmr.msra.gmra.mrb[8].mxu0 %vm21_vm1, %v756_v52 }
 0x238   :  { %v837_v54 = vpop.f32.mrb[8].mxu0 }
 0x239   :  { %v838_v55 = vadd.f32 %v847_v53, %v837_v54  ;;  %v1280_v56 = vpop.f32.mrb[9].mxu0 }
 0x23b   :  { %842 = vst.msk [vmem:[%s2028_s4] sm:$0xff] %vm841_vm9, %v838_v55 }

</bundles_post_ra>
